<compile_context>
chip_gen: v7x
topology: tpu7x:2x2x1
jax: 0.10.0
libtpu: 0.0.40
codegen_flags: <defaults>
</compile_context>

<pallas_src>
import functools

import jax
import jax.numpy as jnp
import numpy as np
from jax import lax
from jax.experimental import pallas as pl
from jax.experimental.pallas import tpu as pltpu

_EPS = 1e-5
_VMEM_LIMIT = 32 * 1024 * 1024     # explicit scoped-VMEM budget (safe on all gens)
_TILE_BUDGET = 10 * 1024 * 1024    # rough per-tile live-set target
_MIN_LANES = 256                   # raise to 512-2048 for production DenseNet sizes


# --------------------------------------------------------------------------- #
# Pass 0: per-channel sum / sum-of-squares over the lane (N*H*W) axis.        #
# --------------------------------------------------------------------------- #
def _chan_stats_kernel(x_ref, sum_ref, sq_ref):
    @pl.when(pl.program_id(0) == 0)
    def _():
        sum_ref[...] = jnp.zeros_like(sum_ref)
        sq_ref[...] = jnp.zeros_like(sq_ref)

    x = x_ref[...]
    sum_ref[...] += jnp.sum(x, axis=1, keepdims=True)
    sq_ref[...] += jnp.sum(x * x, axis=1, keepdims=True)


# --------------------------------------------------------------------------- #
# Pass 1: BN1 (folded affine) + ReLU + 1x1 conv (bf16 MXU, f32 acc).          #
# Also accumulates per-channel sum / sumsq of h (f32) for BN2's global stats. #
# --------------------------------------------------------------------------- #
def _conv1x1_kernel(x_ref, s1_ref, b1_ref, w1_ref, h_ref, hsum_ref, hsq_ref):
    @pl.when(pl.program_id(0) == 0)
    def _():
        hsum_ref[...] = jnp.zeros_like(hsum_ref)
        hsq_ref[...] = jnp.zeros_like(hsq_ref)

    a1 = jnp.maximum(x_ref[...] * s1_ref[...] + b1_ref[...], 0.0)       # f32
    h = jnp.dot(w1_ref[...], a1.astype(jnp.bfloat16),
                preferred_element_type=jnp.float32)                     # [C_inter, T] f32
    hsum_ref[...] += jnp.sum(h, axis=1, keepdims=True)
    hsq_ref[...] += jnp.sum(h * h, axis=1, keepdims=True)
    h_ref[...] = h.astype(h_ref.dtype)                                  # bf16 round trip


# --------------------------------------------------------------------------- #
# Pass 2: BN2 (folded affine) + ReLU + 3x3 "same" conv + in-place concat.     #
# Tiles are whole images, so the boundary masks kill every wrapped roll tap.  #
# --------------------------------------------------------------------------- #
def _conv3x3_kernel(x_ref, h_ref, s2_ref, b2_ref, w2_ref, mask_ref, out_ref, *,
                    C_in, C_out, W):
    T = h_ref.shape[1]

    # Skip connection: write straight into its output slice (no concat copy).
    # (Keep C_in a multiple of 8 in production so this store stays unmasked.)
    out_ref[pl.ds(0, C_in), :] = x_ref[...]

    # BN2 folded affine + ReLU in f32, single cast to bf16 for the 9 taps.
    a2 = jnp.maximum(h_ref[...].astype(jnp.float32) * s2_ref[...] + b2_ref[...], 0.0)
    a2 = a2.astype(jnp.bfloat16)

    # 3x3 conv, padding=1: 9 rolled+masked bf16 taps, tap-accumulated MXU matmuls
    # (no [9*C_inter, T] im2col intermediate; only one tap live at a time).
    # TODO(synk): on v5e with small C_inter, a single fused K=9*C_inter matmul keeps
    # the 128-wide MXU busier than 9 tap matmuls.
    y = jnp.zeros((C_out, T), jnp.float32)
    t = 0
    for dh in (-1, 0, 1):
        for dw in (-1, 0, 1):
            shift = (-(dh * W + dw)) % T                     # static Python int
            tap = pltpu.roll(a2, shift, axis=1) if shift else a2
            tap = tap * mask_ref[pl.ds(t, 1), :]             # bf16 boundary mask
            y += jnp.dot(w2_ref[pl.ds(t * C_out, C_out), :], tap,
                         preferred_element_type=jnp.float32)
            t += 1

    out_ref[pl.ds(C_in, C_out), :] = y.astype(out_ref.dtype)


# --------------------------------------------------------------------------- #
# Wrapper helpers.                                                            #
# --------------------------------------------------------------------------- #
def _choose_imgs_per_tile(N, HW, per_lane_bytes):
    """Smallest whole-image lane tile that is 128-aligned, >= _MIN_LANES and fits
    the per-tile VMEM budget; falls back to the full batch."""
    best = None
    for k in range(1, N + 1):
        if N % k:
            continue
        lanes = k * HW
        if lanes % 128 != 0 and k != N:
            continue                                    # lane blocks must be 128-aligned
        if lanes * per_lane_bytes > _TILE_BUDGET and best is not None:
            break
        best = k
        if lanes >= _MIN_LANES:
            break
    return best if best is not None else N


def _bn_fold(sum_, sq_, count, gamma, beta):
    """Fold training-mode BN into per-channel scale/bias: a = x*scale + bias."""
    mean = sum_ / count
    var = sq_ / count - mean * mean
    scale = gamma.reshape(-1, 1) * lax.rsqrt(var + _EPS)
    bias = beta.reshape(-1, 1) - mean * scale
    return scale, bias


def _make_tap_masks(H, W, imgs_per_tile):
    """[9, imgs_per_tile*H*W] bf16 0/1 masks (host-precomputed: no div/mod in-kernel)."""
    r = np.repeat(np.arange(H), W)
    c = np.tile(np.arange(W), H)
    masks = []
    for dh in (-1, 0, 1):
        for dw in (-1, 0, 1):
            masks.append((r + dh >= 0) & (r + dh < H) & (c + dw >= 0) & (c + dw < W))
    m = np.stack(masks).astype(np.float32)              # [9, H*W]
    m = np.tile(m, (1, imgs_per_tile))                  # [9, T]
    return jnp.asarray(m, dtype=jnp.bfloat16)


def bottleneck_forward(x_nchw, params):
    """x_nchw: [N, C_in, H, W] float32. Returns [N, C_in + C_out, H, W] float32."""
    g1, b1, w1, g2, b2, w2 = params
    N, C_in, H, W = x_nchw.shape
    C_inter = w1.shape[1]
    C_out = w2.shape[-1]
    HW = H * W
    NHW = N * HW
    C_cat = C_in + C_out

    # Rough per-lane live-set bytes of the heaviest pass (pass 2), incl. the
    # double-buffered DMA blocks -- used only to size the lane tile.
    per_lane = (2 * 4 * C_in + 2 * 2 * C_inter + 2 * 4 * C_cat      # x / h / out blocks
                + 3 * 2 * C_inter + 4 * C_out + 2 * 9)              # a2, taps, acc, masks
    imgs_per_tile = _choose_imgs_per_tile(N, HW, per_lane)
    T = imgs_per_tile * HW
    grid = (N // imgs_per_tile,)

    # Layout glue: cheap N<->C axis swap only (no NHWC round trip, no concat).
    x2d = jnp.transpose(x_nchw, (1, 0, 2, 3)).reshape(C_in, NHW)
    w1t = jnp.transpose(w1).astype(jnp.bfloat16)                    # [C_inter, C_in]
    # Per-tap weights: rows (kh, kw, c_out), cols c_inter -> [9*C_out, C_inter].
    w2k = jnp.transpose(w2, (0, 1, 3, 2)).reshape(9 * C_out, C_inter).astype(jnp.bfloat16)
    masks = _make_tap_masks(H, W, imgs_per_tile)                    # [9, T] bf16

    lane_spec = lambda c: pl.BlockSpec((c, T), lambda i: (0, i))
    const_spec = lambda shape: pl.BlockSpec(shape, lambda i: (0, 0))

    params_red = pltpu.CompilerParams(dimension_semantics=("arbitrary",),
                                      vmem_limit_bytes=_VMEM_LIMIT)
    params_par = pltpu.CompilerParams(dimension_semantics=("parallel",),
                                      vmem_limit_bytes=_VMEM_LIMIT)

    # ---- pass 0: x batch statistics -----------------------------------------
    xsum, xsq = pl.pallas_call(
        _chan_stats_kernel,
        grid=grid,
        in_specs=[lane_spec(C_in)],
        out_specs=(const_spec((C_in, 1)), const_spec((C_in, 1))),
        out_shape=(jax.ShapeDtypeStruct((C_in, 1), jnp.float32),
                   jax.ShapeDtypeStruct((C_in, 1), jnp.float32)),
        compiler_params=params_red,
    )(x2d)
    s1, bb1 = _bn_fold(xsum, xsq, NHW, g1, b1)

    # ---- pass 1: BN1 + ReLU + 1x1 conv; h (bf16) + h statistics -------------
    h2d, hsum, hsq = pl.pallas_call(
        _conv1x1_kernel,
        grid=grid,
        in_specs=[lane_spec(C_in),
                  const_spec((C_in, 1)), const_spec((C_in, 1)),
                  const_spec((C_inter, C_in))],
        out_specs=(pl.BlockSpec((C_inter, T), lambda i: (0, i)),
                   const_spec((C_inter, 1)), const_spec((C_inter, 1))),
        out_shape=(jax.ShapeDtypeStruct((C_inter, NHW), jnp.bfloat16),
                   jax.ShapeDtypeStruct((C_inter, 1), jnp.float32),
                   jax.ShapeDtypeStruct((C_inter, 1), jnp.float32)),
        compiler_params=params_red,
    )(x2d, s1, bb1, w1t)
    s2, bb2 = _bn_fold(hsum, hsq, NHW, g2, b2)

    # ---- pass 2: BN2 + ReLU + 3x3 conv + in-place concat --------------------
    kernel2 = functools.partial(_conv3x3_kernel, C_in=C_in, C_out=C_out, W=W)
    out2d = pl.pallas_call(
        kernel2,
        grid=grid,
        in_specs=[lane_spec(C_in),
                  pl.BlockSpec((C_inter, T), lambda i: (0, i)),
                  const_spec((C_inter, 1)), const_spec((C_inter, 1)),
                  const_spec((9 * C_out, C_inter)),
                  const_spec((9, T))],
        out_specs=pl.BlockSpec((C_cat, T), lambda i: (0, i)),
        out_shape=jax.ShapeDtypeStruct((C_cat, NHW), jnp.float32),
        compiler_params=params_par,
    )(x2d, h2d, s2, bb2, w2k, masks)

    return jnp.transpose(out2d.reshape(C_cat, N, H, W), (1, 0, 2, 3))


# --------------------------------------------------------------------------- #
# Pure-JAX f32 reference (same math, XLA ops) for a sanity check.             #
# --------------------------------------------------------------------------- #
def bottleneck_reference(x_nchw, params):
    g1, b1, w1, g2, b2, w2 = params
    x = jnp.transpose(x_nchw, (0, 2, 3, 1))                   # NHWC
    m1 = jnp.mean(x, axis=(0, 1, 2), keepdims=True)
    v1 = jnp.mean((x - m1) ** 2, axis=(0, 1, 2), keepdims=True)
    a1 = jnp.maximum(g1 * (x - m1) * lax.rsqrt(v1 + _EPS) + b1, 0.0)
    h = jnp.einsum('nhwc,cd->nhwd', a1, w1)
    m2 = jnp.mean(h, axis=(0, 1, 2), keepdims=True)
    v2 = jnp.mean((h - m2) ** 2, axis=(0, 1, 2), keepdims=True)
    a2 = jnp.maximum(g2 * (h - m2) * lax.rsqrt(v2 + _EPS) + b2, 0.0)
    y = lax.conv_general_dilated(a2, w2, window_strides=(1, 1), padding='SAME',
                                 dimension_numbers=('NHWC', 'HWIO', 'NHWC'))
    return jnp.concatenate([x_nchw, jnp.transpose(y, (0, 3, 1, 2))], axis=1)


def init_params(key, channel_in, channel_out):
    channel_inter = channel_out * 4
    k1, k2, k3, k4, k5, k6 = jax.random.split(key, 6)
    g1 = 1.0 + 0.1 * jax.random.normal(k1, (1, channel_in), jnp.float32)
    b1 = 0.1 * jax.random.normal(k2, (1, channel_in), jnp.float32)
    w1 = jax.random.normal(k3, (channel_in, channel_inter), jnp.float32) / np.sqrt(channel_in)
    g2 = 1.0 + 0.1 * jax.random.normal(k4, (1, channel_inter), jnp.float32)
    b2 = 0.1 * jax.random.normal(k5, (1, channel_inter), jnp.float32)
    w2 = jax.random.normal(k6, (3, 3, channel_inter, channel_out),
                           jnp.float32) / np.sqrt(9 * channel_inter)
    return (g1, b1, w1, g2, b2, w2)


if __name__ == "__main__":
    key = jax.random.PRNGKey(0)
    kx, kp = jax.random.split(key)

    N, C_in, H, W = 2, 4, 16, 16
    C_out = 4                                   # inter_channel = 16

    x = jax.random.normal(kx, (N, C_in, H, W), jnp.float32)
    params = init_params(kp, C_in, C_out)

    out = jax.block_until_ready(bottleneck_forward(x, params))
    assert out.shape == (N, C_in + C_out, H, W), out.shape

    ref = jax.block_until_ready(bottleneck_reference(x, params))
    # bf16 MXU inputs + bf16 h round trip are an intentional precision trade.
    np.testing.assert_allclose(np.asarray(out), np.asarray(ref), rtol=3e-2, atol=3e-2)

    print("KERNEL_OK")
</pallas_src>

<mosaic_0001>
module attributes {stable_mosaic.version = 11 : i64} {
  func.func @_chan_stats_kernel(%arg0: i32, %arg1: memref<4x256xf32, #tpu.memory_space<vmem>>, %arg2: memref<4x1xf32, #tpu.memory_space<vmem>>, %arg3: memref<4x1xf32, #tpu.memory_space<vmem>>) attributes {dimension_semantics = [#tpu.dimension_semantics<arbitrary>], iteration_bounds = array<i64: 2>, scalar_prefetch = 0 : i64, scratch_operands = 0 : i64, tpu.core_type = #tpu.core_type<tc>, window_params = [{transform_indices = @transform_0, window_bounds = array<i64: 4, 256>}, {pipeline_mode = #tpu.pipeline_mode<synchronous>, transform_indices = @transform_1, window_bounds = array<i64: 4, 1>}, {pipeline_mode = #tpu.pipeline_mode<synchronous>, transform_indices = @transform_2, window_bounds = array<i64: 4, 1>}]} {
    %c0_i32 = arith.constant 0 : i32
    %0 = arith.cmpi eq, %arg0, %c0_i32 : i32
    %1 = arith.extui %0 : i1 to i32
    %c0_i32_0 = arith.constant 0 : i32
    %2 = arith.cmpi ne, %1, %c0_i32_0 : i32
    scf.if %2 {
      %cst_11 = arith.constant 0.000000e+00 : f32
      %15 = vector.broadcast %cst_11 : f32 to vector<4x1xf32>
      %c0_12 = arith.constant 0 : index
      %c0_13 = arith.constant 0 : index
      %16 = vector.load %arg2[%c0_12, %c0_13] : memref<4x1xf32, #tpu.memory_space<vmem>>, vector<4x1xf32>
      tpu.vector_store %arg2[%c0_12, %c0_13], %15 {strides = array<i32>} : memref<4x1xf32, #tpu.memory_space<vmem>>, vector<4x1xf32>,
      %cst_14 = arith.constant 0.000000e+00 : f32
      %17 = vector.broadcast %cst_14 : f32 to vector<4x1xf32>
      %c0_15 = arith.constant 0 : index
      %c0_16 = arith.constant 0 : index
      %18 = vector.load %arg3[%c0_15, %c0_16] : memref<4x1xf32, #tpu.memory_space<vmem>>, vector<4x1xf32>
      tpu.vector_store %arg3[%c0_15, %c0_16], %17 {strides = array<i32>} : memref<4x1xf32, #tpu.memory_space<vmem>>, vector<4x1xf32>,
    } else {
    }
    %c0 = arith.constant 0 : index
    %c0_1 = arith.constant 0 : index
    %3 = vector.load %arg1[%c0, %c0_1] : memref<4x256xf32, #tpu.memory_space<vmem>>, vector<4x256xf32>
    %c0_2 = arith.constant 0 : index
    %c0_3 = arith.constant 0 : index
    %4 = vector.load %arg2[%c0_2, %c0_3] : memref<4x1xf32, #tpu.memory_space<vmem>>, vector<4x1xf32>
    %cst = arith.constant dense<0.000000e+00> : vector<4xf32>
    %5 = vector.multi_reduction <add>, %3, %cst [1] : vector<4x256xf32> to vector<4xf32>
    %6 = vector.shape_cast %5 : vector<4xf32> to vector<4x1xf32>
    %7 = arith.addf %4, %6 : vector<4x1xf32>
    %c0_4 = arith.constant 0 : index
    %c0_5 = arith.constant 0 : index
    %8 = vector.load %arg2[%c0_4, %c0_5] : memref<4x1xf32, #tpu.memory_space<vmem>>, vector<4x1xf32>
    tpu.vector_store %arg2[%c0_4, %c0_5], %7 {strides = array<i32>} : memref<4x1xf32, #tpu.memory_space<vmem>>, vector<4x1xf32>,
    %c0_6 = arith.constant 0 : index
    %c0_7 = arith.constant 0 : index
    %9 = vector.load %arg3[%c0_6, %c0_7] : memref<4x1xf32, #tpu.memory_space<vmem>>, vector<4x1xf32>
    %10 = arith.mulf %3, %3 : vector<4x256xf32>
    %cst_8 = arith.constant dense<0.000000e+00> : vector<4xf32>
    %11 = vector.multi_reduction <add>, %10, %cst_8 [1] : vector<4x256xf32> to vector<4xf32>
    %12 = vector.shape_cast %11 : vector<4xf32> to vector<4x1xf32>
    %13 = arith.addf %9, %12 : vector<4x1xf32>
    %c0_9 = arith.constant 0 : index
    %c0_10 = arith.constant 0 : index
    %14 = vector.load %arg3[%c0_9, %c0_10] : memref<4x1xf32, #tpu.memory_space<vmem>>, vector<4x1xf32>
    tpu.vector_store %arg3[%c0_9, %c0_10], %13 {strides = array<i32>} : memref<4x1xf32, #tpu.memory_space<vmem>>, vector<4x1xf32>,
    return
  }
  func.func @transform_0(%arg0: i32) -> (i32, i32) {
    %c0_i32 = arith.constant 0 : i32
    %c0_i32_0 = arith.constant 0 : i32
    return %c0_i32, %arg0 : i32, i32
  }
  func.func @transform_1(%arg0: i32) -> (i32, i32) {
    %c0_i32 = arith.constant 0 : i32
    %c0_i32_0 = arith.constant 0 : i32
    %c0_i32_1 = arith.constant 0 : i32
    return %c0_i32, %c0_i32_0 : i32, i32
  }
  func.func @transform_2(%arg0: i32) -> (i32, i32) {
    %c0_i32 = arith.constant 0 : i32
    %c0_i32_0 = arith.constant 0 : i32
    %c0_i32_1 = arith.constant 0 : i32
    return %c0_i32, %c0_i32_0 : i32, i32
  }
}

</mosaic_0001>

<bundles_post_ra>
// kernel: tpu_custom_call.1
= control target key start
LH: loop header
LB: loop body
LE: loop exit
PB: predicated region body
PF: predicated region fallthrough
CT: control target
= control target key end

     0   :  { %8 = vsyncpa [#allocation3], 0  ;;  %s481_s0 = inlined_call_operand.hbm [shape: f32[4,512], index: 0, kind: input, shape index: {}]   ;;  %s482_s1 = inlined_call_operand.vmem [shape: f32[4,1], index: 1, kind: output, shape index: {0}]   ;;  %s483_s2 = inlined_call_operand.vmem [shape: f32[4,1], index: 2, kind: output, shape index: {1}]  }
   0x1   :  { %10 = vsyncpa [#allocation3 + $0x1], 0  ;;  %s360_s9 = smov 0   ;;  %s362_s10 = smov 0  }
   0x2   :  { %s364_s11 = smov 0   ;;  %s366_s12 = smov 0  }
   0x3 LB: > { %s224_s13 = sadd.s32 4294967295, %s341_s12   ;;  %s380_s14 = sadd.s32 1, %s341_s12   ;;  %s341_s12 = sphi %s366_s12, %s491_s12   ;;  %s337_s11 = sphi %s364_s11, %s490_s11   ;;  %s333_s10 = sphi %s362_s10, %s489_s10   ;;  %s329_s9 = sphi %s360_s9, %s488_s9  }
   0x4   : > { %s20_s15 = ssub.s32 %s341_s12, %s380_s14  ;;  %s23_s16 = sadd.s32 1, %s337_s11 }
   0x5   : > { %p21_p0 = scmp.eq.s32.totalorder %s20_s15, 0  ;;  %p30_p1 = scmp.ne.s32.totalorder %s337_s11, %s333_s10 }
   0x6   : > { %p31_p2 = scmp.eq.s32.totalorder %s341_s12, 0  ;;  %p36_p3 = scmp.ne.s32.totalorder %s333_s10, %s329_s9 }
   0x7   : > { %s390_s17 = scalar_select %p21_p0, %s337_s11, %s23_s16  }
   0x8   : > { %p32_p4 = por %p31_p2, %p30_p1  ;;  %p37_p5 = scmp.eq.s32.totalorder %s224_s13, 0 }
   0x9   : > { %p242_p6 = scmp.lt.s32.totalorder %s341_s12, 2  ;;  %s102_s19 = sand.u32 1, %s337_s11  }
   0xa   : > { %p395_p7 = por %p37_p5, %p36_p3  ;;  %s227_s20 = sshll.u32 %s102_s19, 3 }
   0xb   : > { %s235_s21 = sshll.u32 %s341_s12, 7  ;;  %s106_s25 = scalar_lea.vmem [#allocation2], %s227_s20 }
   0xc   : > { %s404_s24 = scalar_lea.hbm %s481_s0, %s235_s21  ;;  %s114_s26 = sshll.u32 %s106_s25, 4  ;;  %s406_s26 = int_to_ptr.vmem [resolvable:$true] %s114_s26 }
   0xd   : > { %p408_p8 = pnand %p242_p6, %p32_p4  ;;  %s103_s28 = scalar_lea.sflag [#allocation3], %s102_s19 }
   0xe   : > { %s277_s29 = scalar_lea.hbm %s404_s24, 128  ;;  %s282_s4 = scalar_lea.hbm %s481_s0, 256 }
   0xf   : > { %p278_p11 = scmp.ne.s32.totalorder %s404_s24, %s277_s29  ;;  %p279_p12 = pneg %p408_p8 }
  0x10   : > { %p283_p1 = scmp.lt.u32.totalorder %s404_s24, %s481_s0  ;;  %p284_p2 = scmp.lt.u32.totalorder %s282_s4, %s277_s29 }
  0x11   : > { %p280_p13 = pnand %p279_p12, %p278_p11  ;;  %p286_p4 = scmp.lt.u32.totalorder %s277_s29, %s404_s24 }
  0x12   : > { %p285_p3 = por %p284_p2, %p283_p1 }
  0x13   : > { %p281_p0 = pneg %p280_p13 }
  0x14   : > { %p287_p5 = por %p286_p4, %p285_p3 }
  0x16   : > { %p288_p6 = pnand %p287_p5, %p281_p0 }
  0x18   : > { %291 = shalt.err (!%p288_p6)
}
  0x19   : > { %s292_s7 = scalar_lea.vmem %s406_s26, 128  ;;  %s343_s8 = smov [#allocation2]  }
  0x1a   : > { %p293_p11 = scmp.ne.s32.totalorder %s406_s26, %s292_s7  ;;  %s297_s9 = sshll.u32 %s343_s8, 4  ;;  %s298_s9 = int_to_ptr.vmem [resolvable:$false] %s297_s9 }
  0x1b   : > { %s299_s15 = scalar_lea.vmem %s298_s9, 256  ;;  %p300_p10 = scmp.lt.s32.totalorder %s406_s26, %s298_s9 }
  0x1c   : > { %p295_p13 = pnand %p293_p11, %p279_p12  ;;  %p301_p1 = scmp.lt.s32.totalorder %s299_s15, %s292_s7 }
  0x1e   : > { %p296_p9 = pneg %p295_p13  ;;  %p302_p2 = por %p301_p1, %p300_p10 }
  0x20   : > { %p303_p3 = pnand %p302_p2, %p296_p9 }
  0x22   : > { %306 = shalt.err (!%p303_p3)
}
  0x23   : > { %241 = dma.hbm_to_vmem [thread:$0]  (!%p408_p8), %s404_s24, 128, %s406_s26, %s103_s28  }
  0x24   : > { %p486_p0 = scmp.lt.s32.totalorder %s341_s12, 3  ;;  %p487_p4 = scmp.ge.s32.totalorder %s341_s12, 1 }
  0x26   : > { %p120_p12 = pnand %p487_p4, %p486_p0 }
  0x27   : > { %s125_s16 = sand.u32 (!%p120_p12), 1, %s333_s10  }
  0x28   : > { %123 = sbr.rel (%p120_p12) target bundleno = 212 (0xd4), region = 24  ;;  %s231_s19 = sshll.u32 (!%p120_p12), %s125_s16, 3 }
  0x29   : > { %s126_s20 = scalar_lea.sflag (!%p120_p12), [#allocation3], %s125_s16  ;;  %s129_s21 = scalar_lea.vmem (!%p120_p12), [#allocation2], %s231_s19 }
  0x2f   : > { %324 = dma.done.wait (%p395_p7), %s126_s20, 128  }
  0x30   : > { %326 = vsyncadd (%p395_p7), %s126_s20, 4294967168  ;;  %p232_p9 = scmp.ne.s32.totalorder %s224_s13, 0 }
  0x31   : > { %vm150_vm0 = vcmask (!%p232_p9), 3072   ;;  %v344_v0 = vmov (!%p232_p9), 0.0  }
  0x32   : > { %149 = sbr.rel (%p232_p9) target bundleno = 57 (0x39), region = 32  ;;  %151 = vst.msk [vmem:[%s482_s1] sm:$0xf] (!%p232_p9), %vm150_vm0, %v344_v0  ;;  %152 = vst.msk [vmem:[%s483_s2] sm:$0xf] (!%p232_p9), %vm150_vm0, %v344_v0 }
  0x39 PF: > { %v153_v1 = vld [vmem:[%s129_s21] sm:$0xff]  ;;  %vm158_vm1 = vcmask 1043456   ;;  %vm165_vm2 = vcmask 3072  }
  0x3a   : > { %v156_v2 = vcombine.high %v153_v1, %v153_v1  ;;  %v159_v3 = vsel %vm158_vm1, %v153_v1, 0.0  ;;  %v168_v4 = vmul.f32 %v153_v1, %v153_v1  ;;  %v154_v11 = vld [vmem:[%s482_s1] sm:$0xf] }
  0x3b   : > { %v167_v14 = vld [vmem:[%s483_s2] sm:$0xf] }
  0x3c   : > { %v160_v5 = vsel %vm158_vm1, %v156_v2, 0.0  ;;  %v170_v6 = vcombine.high %v168_v4, %v168_v4  ;;  %v172_v7 = vsel %vm158_vm1, %v168_v4, 0.0 }
  0x3d   : > { %v161_v8 = vadd.f32 %v160_v5, %v159_v3 }
  0x3e   : > { %v173_v9 = vsel %vm158_vm1, %v170_v6, 0.0 }
  0x3f   : > { %162 = vadd.xlane.f32.xlu0 %v161_v8  ;;  %v174_v10 = vadd.f32 %v173_v9, %v172_v7 }
  0x43   : > { %175 = vadd.xlane.f32.xlu0 %v174_v10 }
  0xcc   : > { %v163_v12 = vpop.xlane.xlu0 %162 }
  0xcd   : > { %v164_v13 = vadd.f32 %v163_v12, %v154_v11 }
  0xcf   : > { %166 = vst.msk [vmem:[%s482_s1] sm:$0xf] %vm165_vm2, %v164_v13 }
  0xd0   : > { %v176_v15 = vpop.xlane.xlu0 %175 }
  0xd1   : > { %v177_v16 = vadd.f32 %v176_v15, %v167_v14 }
  0xd3   : > { %178 = vst.msk [vmem:[%s483_s2] sm:$0xf] %vm165_vm2, %v177_v16 }
  0xd4 PF: > { %p13_p7 = scmp.ge.s32.totalorder %s380_s14, 4   ;;  %s488_s9 = smov %s333_s10 }
  0xd5   : > { %s489_s10 = smov %s337_s11  ;;  %s490_s11 = smov %s390_s17 }
  0xd6   : > { %s491_s12 = smov %s380_s14  ;;  %15 = sbr.rel (!%p13_p7) target bundleno = 3 (0x3), region = 72 }
  0xdd   :  { %196 = vsyncpa [#allocation3], 1 }
  0xde   :  { %198 = vsyncpa [#allocation3 + $0x1], 1 }

</bundles_post_ra>
